<compile_context>
chip_gen: v7x
topology: tpu7x:2x2x1
jax: 0.10.0
libtpu: 0.0.40
codegen_flags: <defaults>
</compile_context>

<pallas_src>
import functools

import jax
import jax.numpy as jnp
from jax.experimental import pallas as pl
from jax.experimental.pallas import tpu as pltpu

PAD = 0  # Constants.PAD


def _hash_u32(x):
    """lowbias32-style integer finalizer on uint32 arrays (pure VPU ops)."""
    x = x ^ (x >> 16)
    x = x * jnp.uint32(0x7FEB352D)
    x = x ^ (x >> 15)
    x = x * jnp.uint32(0x846CA68B)
    x = x ^ (x >> 16)
    return x


def _bert_embed_kernel(seed_ref, ids1_ref, ids2_ref,      # scalar prefetch (SMEM)
                       tq_ref, ts_ref,                    # VMEM-resident tables
                       out1_ref, out2_ref,                # dense (TQ, E) out blocks
                       *, block_tokens, p, training):
    step = pl.program_id(0)
    base = step * block_tokens

    # Row gather: token ids in SMEM drive dynamic-sublane loads from the
    # VMEM-resident tables straight into the dense output block.  No per-row
    # HBM DMAs; HBM writeback is one (TQ, E) DMA per table per grid step.
    @pl.loop(0, block_tokens)
    def _(k):
        q_id = ids1_ref[base + k]
        s_id = ids2_ref[base + k]
        out1_ref[pl.ds(k, 1), :] = tq_ref[pl.ds(q_id, 1), :]
        out2_ref[pl.ds(k, 1), :] = ts_ref[pl.ds(s_id, 1), :]

    if not (training and 0.0 < p < 1.0):
        return  # eval mode / p == 0: lookup only (p >= 1 handled in wrapper)

    # Inverted dropout.  ONE hash per element: low 16 bits gate tokenQ, high 16
    # bits gate tokenS (keep iff bits16 >= floor(p * 2**16); drop probability
    # is quantized to 1/65536).  Two-stage counter (token hash, then column
    # mix) so the stream never wraps even when n * E exceeds 2**32.
    e = out1_ref.shape[1]
    thr16 = jnp.uint32(min(int(p * 65536.0), 65535))
    scale = jnp.float32(1.0 / (1.0 - p))
    seed = seed_ref[0].astype(jnp.uint32)

    tok = base.astype(jnp.uint32) + jax.lax.broadcasted_iota(
        jnp.int32, (block_tokens, 1), 0).astype(jnp.uint32)
    row_mix = _hash_u32(tok ^ (seed * jnp.uint32(0x9E3779B1)))         # (TQ, 1)
    # NOTE: the column iota is regenerated each step on purpose: it is a single
    # hardware iota op, and caching it in scratch under pl.when(step == 0)
    # would be wrong on megacore parts where each core starts at a different
    # grid step.
    col = jax.lax.broadcasted_iota(
        jnp.int32, (block_tokens, e), 1).astype(jnp.uint32)
    bits = _hash_u32(row_mix ^ col)                                    # (TQ, E)

    keep_q = (bits & jnp.uint32(0xFFFF)) >= thr16
    keep_s = (bits >> 16) >= thr16
    out1_ref[...] = jnp.where(
        keep_q, out1_ref[...].astype(jnp.float32) * scale, 0.0
    ).astype(out1_ref.dtype)
    out2_ref[...] = jnp.where(
        keep_s, out2_ref[...].astype(jnp.float32) * scale, 0.0
    ).astype(out2_ref.dtype)


def bert_embedding_forward(input_1, input_2, table_q, table_s, *,
                           dropout, training, seed=0, block_tokens=None):
    """Fused tokenQ/tokenS embedding lookup + (inverted) dropout."""
    b, l = input_1.shape
    assert input_2.shape == (b, l)
    vq, e = table_q.shape
    vs, e2 = table_s.shape
    assert e == e2
    n = b * l
    p = float(dropout)

    # Degenerate dropout handled outside the kernel: skips all HBM reads.
    if training and p >= 1.0:
        return (jnp.zeros((b, l, e), table_q.dtype),
                jnp.zeros((b, l, e), table_s.dtype))

    # Token-block size: multiple of 8 sublanes (f32 tile), default 128.
    if block_tokens is None:
        block_tokens = 128
    block_tokens = max(8, min(int(block_tokens), pl.cdiv(n, 8) * 8))
    block_tokens = (block_tokens // 8) * 8
    n_pad = pl.cdiv(n, block_tokens) * block_tokens

    # Conservative VMEM budget: tables + outputs, double-buffered.
    itm = table_q.dtype.itemsize
    vmem_est = 2 * (vq + vs) * e * itm + 2 * 2 * block_tokens * e * itm
    assert vmem_est <= 28 * 1024 * 1024, (
        "embedding tables too large for the VMEM-resident gather path")
    # TODO(synk): large-vocab path — keep tables in HBM (memory_space=pl.ANY)
    # and gather TQ rows per step with double-buffered pltpu.make_async_copy.

    # Token ids -> SMEM scalar prefetch.  Clamp so a bad id cannot address out
    # of bounds (torch nn.Embedding would raise instead of clamping).
    ids1 = jnp.clip(input_1.reshape(n).astype(jnp.int32), 0, vq - 1)
    ids2 = jnp.clip(input_2.reshape(n).astype(jnp.int32), 0, vs - 1)
    if n_pad != n:
        pad = n_pad - n
        ids1 = jnp.concatenate([ids1, jnp.full((pad,), PAD, jnp.int32)])
        ids2 = jnp.concatenate([ids2, jnp.full((pad,), PAD, jnp.int32)])
    # TODO(synk): for n >= ~32K tokens, chunk the call along the batch axis so
    # the two i32[n] scalar-prefetch arrays do not exhaust SMEM.
    seed_arr = jnp.asarray([seed], dtype=jnp.int32)

    kernel = functools.partial(
        _bert_embed_kernel, block_tokens=block_tokens, p=p,
        training=bool(training))

    out1, out2 = pl.pallas_call(
        kernel,
        out_shape=(jax.ShapeDtypeStruct((n_pad, e), table_q.dtype),
                   jax.ShapeDtypeStruct((n_pad, e), table_s.dtype)),
        grid_spec=pltpu.PrefetchScalarGridSpec(
            num_scalar_prefetch=3,
            grid=(n_pad // block_tokens,),
            in_specs=[
                # Full-extent blocks with constant index_map: each table is
                # DMA'd into VMEM once and stays resident across the grid.
                pl.BlockSpec((vq, e), lambda i, s, i1, i2: (0, 0)),
                pl.BlockSpec((vs, e), lambda i, s, i1, i2: (0, 0)),
            ],
            out_specs=[
                pl.BlockSpec((block_tokens, e), lambda i, s, i1, i2: (i, 0)),
                pl.BlockSpec((block_tokens, e), lambda i, s, i1, i2: (i, 0)),
            ],
        ),
        compiler_params=pltpu.CompilerParams(
            dimension_semantics=("parallel",),     # megacore-shard token blocks
            vmem_limit_bytes=32 * 1024 * 1024),
    )(seed_arr, ids1, ids2, table_q, table_s)

    return out1[:n].reshape(b, l, e), out2[:n].reshape(b, l, e)


class BERTEmbeddingPallas:
    """JAX/Pallas port of the PyTorch BERTEmbedding module (forward only)."""

    def __init__(self, q_vocab_size, s_vocab_size, embed_size, dropout, key):
        kq, ks = jax.random.split(key)
        wq = jax.random.normal(kq, (q_vocab_size, embed_size), jnp.float32)
        ws = jax.random.normal(ks, (s_vocab_size, embed_size), jnp.float32)
        # padding_idx rows are zero, matching nn.Embedding(padding_idx=PAD).
        self.tokenQ = wq.at[PAD].set(0.0)
        self.tokenS = ws.at[PAD].set(0.0)
        self.p = float(dropout)

    def __call__(self, input_1, input_2, training=True, seed=0):
        return bert_embedding_forward(
            input_1, input_2, self.tokenQ, self.tokenS,
            dropout=self.p, training=training, seed=seed)


if __name__ == "__main__":
    key = jax.random.PRNGKey(0)
    k_param, k_idx1, k_idx2, k_idx3, k_idx4 = jax.random.split(key, 5)

    B, L, E = 2, 8, 128
    Q_VOCAB, S_VOCAB = 64, 96
    DROPOUT = 0.1

    model = BERTEmbeddingPallas(Q_VOCAB, S_VOCAB, E, DROPOUT, k_param)

    input_1 = jax.random.randint(k_idx1, (B, L), 0, Q_VOCAB, dtype=jnp.int32)
    input_2 = jax.random.randint(k_idx2, (B, L), 0, S_VOCAB, dtype=jnp.int32)

    # Eval mode (dropout = identity): exact match against pure-JAX gather.
    e1_eval, e2_eval = model(input_1, input_2, training=False)
    jax.block_until_ready((e1_eval, e2_eval))
    ref1 = jnp.take(model.tokenQ, input_1, axis=0)
    ref2 = jnp.take(model.tokenS, input_2, axis=0)
    assert e1_eval.shape == (B, L, E) and e2_eval.shape == (B, L, E)
    assert jnp.allclose(e1_eval, ref1, atol=1e-6), "tokenQ embedding mismatch"
    assert jnp.allclose(e2_eval, ref2, atol=1e-6), "tokenS embedding mismatch"

    # Non-multiple-of-block token count exercises the padding/slicing path.
    Bo, Lo = 3, 5
    odd_1 = jax.random.randint(k_idx3, (Bo, Lo), 0, Q_VOCAB, dtype=jnp.int32)
    odd_2 = jax.random.randint(k_idx4, (Bo, Lo), 0, S_VOCAB, dtype=jnp.int32)
    o1, o2 = model(odd_1, odd_2, training=False)
    jax.block_until_ready((o1, o2))
    assert jnp.allclose(o1, jnp.take(model.tokenQ, odd_1, axis=0), atol=1e-6)
    assert jnp.allclose(o2, jnp.take(model.tokenS, odd_2, axis=0), atol=1e-6)

    # Training mode: every element must be either dropped (0) or kept and
    # scaled by 1/(1-p).
    e1_tr, e2_tr = model(input_1, input_2, training=True, seed=123)
    jax.block_until_ready((e1_tr, e2_tr))
    assert e1_tr.shape == (B, L, E) and e2_tr.shape == (B, L, E)
    scale = 1.0 / (1.0 - DROPOUT)
    ok1 = jnp.all(jnp.isclose(e1_tr, 0.0) | jnp.isclose(e1_tr, ref1 * scale, atol=1e-5))
    ok2 = jnp.all(jnp.isclose(e2_tr, 0.0) | jnp.isclose(e2_tr, ref2 * scale, atol=1e-5))
    assert bool(ok1) and bool(ok2), "dropout output not in {0, x/(1-p)}"

    print("KERNEL_OK")
</pallas_src>

<mosaic_0001>
module attributes {stable_mosaic.version = 11 : i64} {
  func.func @_bert_embed_kernel(%arg0: i32, %arg1: memref<1xi32, #tpu.memory_space<smem>>, %arg2: memref<16xi32, #tpu.memory_space<smem>>, %arg3: memref<16xi32, #tpu.memory_space<smem>>, %arg4: memref<64x128xf32, #tpu.memory_space<vmem>>, %arg5: memref<96x128xf32, #tpu.memory_space<vmem>>, %arg6: memref<16x128xf32, #tpu.memory_space<vmem>>, %arg7: memref<16x128xf32, #tpu.memory_space<vmem>>) attributes {dimension_semantics = [#tpu.dimension_semantics<parallel>], iteration_bounds = array<i64: 1>, scalar_prefetch = 3 : i64, scratch_operands = 0 : i64, tpu.core_type = #tpu.core_type<tc>, window_params = [{pipeline_mode = #tpu.pipeline_mode<synchronous>, transform_indices = @transform_0, window_bounds = array<i64: 64, 128>}, {pipeline_mode = #tpu.pipeline_mode<synchronous>, transform_indices = @transform_1, window_bounds = array<i64: 96, 128>}, {transform_indices = @transform_2, window_bounds = array<i64: 16, 128>}, {transform_indices = @transform_3, window_bounds = array<i64: 16, 128>}]} {
    %c16_i32 = arith.constant 16 : i32
    %0 = arith.muli %arg0, %c16_i32 : i32
    %c0_i32 = arith.constant 0 : i32
    %c16_i32_0 = arith.constant 16 : i32
    %1 = arith.addi %c0_i32, %c16_i32_0 : i32
    %c1_i32 = arith.constant 1 : i32
    scf.for %arg8 = %c0_i32 to %1 step %c1_i32  : i32 {
      %c1_i32_2 = arith.constant 1 : i32
      %2 = arith.muli %arg8, %c1_i32_2 : i32
      %c0_i32_3 = arith.constant 0 : i32
      %3 = arith.addi %c0_i32_3, %2 : i32
      %4 = arith.addi %0, %3 : i32
      %5 = arith.index_cast %4 : i32 to index
      %6 = memref.load %arg2[%5] : memref<16xi32, #tpu.memory_space<smem>>
      %7 = arith.addi %0, %3 : i32
      %8 = arith.index_cast %7 : i32 to index
      %9 = memref.load %arg3[%8] : memref<16xi32, #tpu.memory_space<smem>>
      %10 = arith.index_cast %6 : i32 to index
      %c0 = arith.constant 0 : index
      %11 = vector.load %arg4[%10, %c0] : memref<64x128xf32, #tpu.memory_space<vmem>>, vector<1x128xf32>
      %12 = arith.index_cast %3 : i32 to index
      %c0_4 = arith.constant 0 : index
      %13 = vector.load %arg6[%12, %c0_4] : memref<16x128xf32, #tpu.memory_space<vmem>>, vector<1x128xf32>
      tpu.vector_store %arg6[%12, %c0_4], %11 {strides = array<i32>} : memref<16x128xf32, #tpu.memory_space<vmem>>, vector<1x128xf32>,
      %14 = arith.index_cast %9 : i32 to index
      %c0_5 = arith.constant 0 : index
      %15 = vector.load %arg5[%14, %c0_5] : memref<96x128xf32, #tpu.memory_space<vmem>>, vector<1x128xf32>
      %16 = arith.index_cast %3 : i32 to index
      %c0_6 = arith.constant 0 : index
      %17 = vector.load %arg7[%16, %c0_6] : memref<16x128xf32, #tpu.memory_space<vmem>>, vector<1x128xf32>
      tpu.vector_store %arg7[%16, %c0_6], %15 {strides = array<i32>} : memref<16x128xf32, #tpu.memory_space<vmem>>, vector<1x128xf32>,
    }
    %c16_i32_1 = arith.constant 16 : i32
    return
  }
  func.func @transform_0(%arg0: i32, %arg1: memref<1xi32, #tpu.memory_space<smem>>, %arg2: memref<16xi32, #tpu.memory_space<smem>>, %arg3: memref<16xi32, #tpu.memory_space<smem>>) -> (i32, i32) {
    %c0_i32 = arith.constant 0 : i32
    %c0_i32_0 = arith.constant 0 : i32
    %c0_i32_1 = arith.constant 0 : i32
    return %c0_i32, %c0_i32_0 : i32, i32
  }
  func.func @transform_1(%arg0: i32, %arg1: memref<1xi32, #tpu.memory_space<smem>>, %arg2: memref<16xi32, #tpu.memory_space<smem>>, %arg3: memref<16xi32, #tpu.memory_space<smem>>) -> (i32, i32) {
    %c0_i32 = arith.constant 0 : i32
    %c0_i32_0 = arith.constant 0 : i32
    %c0_i32_1 = arith.constant 0 : i32
    return %c0_i32, %c0_i32_0 : i32, i32
  }
  func.func @transform_2(%arg0: i32, %arg1: memref<1xi32, #tpu.memory_space<smem>>, %arg2: memref<16xi32, #tpu.memory_space<smem>>, %arg3: memref<16xi32, #tpu.memory_space<smem>>) -> (i32, i32) {
    %c0_i32 = arith.constant 0 : i32
    %c0_i32_0 = arith.constant 0 : i32
    return %arg0, %c0_i32 : i32, i32
  }
  func.func @transform_3(%arg0: i32, %arg1: memref<1xi32, #tpu.memory_space<smem>>, %arg2: memref<16xi32, #tpu.memory_space<smem>>, %arg3: memref<16xi32, #tpu.memory_space<smem>>) -> (i32, i32) {
    %c0_i32 = arith.constant 0 : i32
    %c0_i32_0 = arith.constant 0 : i32
    return %arg0, %c0_i32 : i32, i32
  }
}

</mosaic_0001>

<bundles_post_ra>
// kernel: tpu_custom_call.1
= control target key start
LH: loop header
LB: loop body
LE: loop exit
PB: predicated region body
PF: predicated region fallthrough
CT: control target
= control target key end

     0   :  { %s380_s0 = inlined_call_operand.<no memory space> [shape: s32[1], index: 0, kind: input, shape index: {}]   ;;  %s381_s1 = inlined_call_operand.vmem [shape: s32[16], index: 1, kind: input, shape index: {}]   ;;  %s382_s3 = inlined_call_operand.hbm [shape: f32[64,128], index: 3, kind: input, shape index: {}]   ;;  %s383_s4 = inlined_call_operand.hbm [shape: f32[96,128], index: 4, kind: input, shape index: {}]   ;;  %s384_s5 = inlined_call_operand.hbm [shape: f32[16,128], index: 5, kind: output, shape index: {0}]   ;;  %s385_s6 = inlined_call_operand.hbm [shape: f32[16,128], index: 6, kind: output, shape index: {1}]   ;;  %s386_s2 = inlined_call_operand.vmem [shape: s32[16], index: 2, kind: input, shape index: {}]  }
   0x1   :  { %s13_s22 = sshll.u32 %s381_s1, 4  ;;  %s17_s25 = sshll.u32 %s386_s2, 4  ;;  %s14_s22 = int_to_ptr.vmem [resolvable:$true] %s13_s22  ;;  %s18_s25 = int_to_ptr.vmem [resolvable:$true] %s17_s25 }
   0x2   :  { %s134_s26 = scalar_lea.vmem %s14_s22, 16  ;;  %p139_p1 = scmp.lt.s32.totalorder %s14_s22, %s14_s22 }
   0x3   :  { %p135_p0 = scmp.ne.s32.totalorder %s14_s22, %s134_s26  ;;  %p140_p2 = scmp.lt.s32.totalorder %s134_s26, %s134_s26 }
   0x5   :  { %p141_p3 = por %p140_p2, %p139_p1 }
   0x7   :  { %p142_p4 = pnand %p141_p3, %p135_p0 }
   0x9   :  { %145 = shalt.err (!%p142_p4)  }
   0xa   :  { %s264_s27 = smov [#allocation4]   ;;  %s146_s28 = scalar_lea.vmem %s18_s25, 16 }
   0xb   :  { %16 = dma.vmem_to_smem %s14_s22, 16, %s264_s27, [#allocation2] }
   0xc   :  { %p147_p5 = scmp.ne.s32.totalorder %s18_s25, %s146_s28  ;;  %p151_p6 = scmp.lt.s32.totalorder %s18_s25, %s18_s25 }
   0xd   :  { %p152_p7 = scmp.lt.s32.totalorder %s146_s28, %s146_s28 }
   0xf   :  { %p153_p8 = por %p152_p7, %p151_p6 }
  0x11   :  { %p154_p9 = pnand %p153_p8, %p147_p5 }
  0x13   :  { %157 = shalt.err (!%p154_p9)  }
  0x14   :  { %s265_s1 = smov [#allocation5]  }
  0x15   :  { %20 = dma.vmem_to_smem %s18_s25, 16, %s265_s1, [#allocation2] }
  0x16   :  { %250 = dma.done.wait [#allocation2], 32 }
  0x17   :  { %251 = vsyncadd [#allocation2], 4294967264 }
  0x18   :  { %22 = sfence }
  0x19   :  { %23 = vsyncpa [#allocation7], 0 }
  0x1a   :  { %24 = vsyncpa [#allocation10], 0 }
  0x1b   :  { %25 = vsyncpa [#allocation8], 0 }
  0x1c   :  { %26 = vsyncpa [#allocation13], 0  ;;  %s266_s2 = smov [#allocation6]   ;;  %s158_s8 = scalar_lea.hbm %s382_s3, 1024 }
  0x1d   :  { %s32_s29 = sshll.u32 %s266_s2, 4  ;;  %p159_p10 = scmp.ne.s32.totalorder %s382_s3, %s158_s8  ;;  %s33_s29 = int_to_ptr.vmem [resolvable:$true] %s32_s29 }
  0x1e   :  { %p162_p11 = scmp.lt.u32.totalorder %s158_s8, %s382_s3 }
  0x20   :  { %p164_p12 = pnand %p162_p11, %p159_p10 }
  0x22   :  { %167 = shalt.err (!%p164_p12)
}
  0x23   :  { %s168_s13 = scalar_lea.vmem %s33_s29, 1024  ;;  %p173_p0 = scmp.lt.s32.totalorder %s33_s29, %s33_s29 }
  0x24   :  { %p169_p13 = scmp.ne.s32.totalorder %s33_s29, %s168_s13  ;;  %p174_p1 = scmp.lt.s32.totalorder %s168_s13, %s168_s13 }
  0x26   :  { %p175_p2 = por %p174_p1, %p173_p0 }
  0x28   :  { %p176_p3 = pnand %p175_p2, %p169_p13 }
  0x2a   :  { %179 = shalt.err (!%p176_p3)
}
  0x2b   :  { %s267_s14 = smov 128   ;;  %s268_s15 = smov 8  }
  0x2c   :  { %38 = dma.hbm_to_vmem [thread:$0]  %s382_s3, 1024, %s33_s29, [#allocation7], %s267_s14, %s267_s14, %s268_s15  }
  0x2d   :  { %s269_s18 = smov [#allocation9]   ;;  %s180_s0 = scalar_lea.hbm %s383_s4, 1536 }
  0x2e   :  { %s44_s19 = sshll.u32 %s269_s18, 4  ;;  %p181_p4 = scmp.ne.s32.totalorder %s383_s4, %s180_s0  ;;  %s45_s19 = int_to_ptr.vmem [resolvable:$true] %s44_s19 }
  0x2f   :  { %p184_p5 = scmp.lt.u32.totalorder %s180_s0, %s383_s4 }
  0x31   :  { %p186_p6 = pnand %p184_p5, %p181_p4 }
  0x33   :  { %189 = shalt.err (!%p186_p6)
}
  0x34   :  { %s190_s26 = scalar_lea.vmem %s45_s19, 1536  ;;  %p195_p8 = scmp.lt.s32.totalorder %s45_s19, %s45_s19 }
  0x35   :  { %p191_p7 = scmp.ne.s32.totalorder %s45_s19, %s190_s26  ;;  %p196_p9 = scmp.lt.s32.totalorder %s190_s26, %s190_s26 }
  0x37   :  { %p197_p10 = por %p196_p9, %p195_p8 }
  0x39   :  { %p198_p11 = pnand %p197_p10, %p191_p7 }
  0x3b   :  { %201 = shalt.err (!%p198_p11)
}
  0x3c   :  { %50 = dma.hbm_to_vmem [thread:$0]  %s383_s4, 1536, %s45_s19, [#allocation10], %s267_s14, %s267_s14, %s268_s15  }
  0x3d   :  { %252 = dma.done.wait [#allocation7], 1024  }
  0x3e   :  { %253 = vsyncadd [#allocation7], 4294966272 }
  0x3f   :  { %254 = dma.done.wait [#allocation10], 1536  }
  0x40   :  { %255 = vsyncadd [#allocation10], 4294965760  ;;  %s260_s28 = smov 0  }
  0x41 LB: > { %s65_s1 = sld [smem:[#allocation4 + %s262_s28]]  ;;  %s69_s30 = scalar_lea.vmem [#allocation11], %s262_s28  ;;  %s262_s28 = sphi %s260_s28, %s63_s28  }
  0x42   : > { %s66_s2 = sld [smem:[#allocation5 + %s262_s28]]  ;;  %s73_s8 = scalar_lea.vmem [#allocation12], %s262_s28 }
  0x43   : > { %s63_s28 = sadd.s32 1, %s262_s28  }
  0x44   : > { %p60_p12 = scmp.ge.s32.totalorder %s63_s28, 16  }
  0x45   :  { %s270_s4 = smov (%p60_p12), [#allocation11]   ;;  %s271_s10 = smov (%p60_p12), [#allocation12]  }
  0x46   :  { %62 = sbr.rel (!%p60_p12) target bundleno = 65 (0x41), region = 55  ;;  %s80_s9 = sshll.u32 (%p60_p12), %s270_s4, 4  ;;  %s81_s9 = int_to_ptr.vmem [resolvable:$true] %s80_s9 }
  0x47   : > { %s67_s29 = scalar_lea.vmem [#allocation6], %s65_s1  ;;  %s92_s11 = sshll.u32 (%p60_p12), %s271_s10, 4  ;;  %s343_s11 = int_to_ptr.vmem [resolvable:$true] %s92_s11 }
  0x48   : > { %v68_v0 = vld [vmem:[%s67_s29] sm:$0x1]  ;;  %s71_s7 = scalar_lea.vmem [#allocation9], %s66_s2  ;;  %s202_s12 = scalar_lea.vmem (%p60_p12), %s81_s9, 256 }
  0x49   : > { %70 = vst [vmem:[%s69_s30] sm:$0x1] %v68_v0  ;;  %v72_v1 = vld [vmem:[%s71_s7] sm:$0x1]  ;;  %p203_p13 = scmp.ne.s32.totalorder (%p60_p12), %s81_s9, %s202_s12  ;;  %p207_p0 = scmp.lt.s32.totalorder (%p60_p12), %s81_s9, %s81_s9 }
  0x4a   : > { %74 = vst [vmem:[%s73_s8] sm:$0x1] %v72_v1  ;;  %p208_p1 = scmp.lt.s32.totalorder (%p60_p12), %s202_s12, %s202_s12 }
  0x4c   :  { %p209_p2 = por (%p60_p12), %p208_p1, %p207_p0 }
  0x4e   :  { %p210_p3 = pnand %p209_p2, %p203_p13 }
  0x50   :  { %213 = shalt.err (!%p210_p3)
}
  0x51   :  { %s214_s17 = scalar_lea.hbm %s384_s5, 256 }
  0x52   :  { %p215_p4 = scmp.ne.s32.totalorder %s384_s5, %s214_s17  ;;  %p218_p5 = scmp.lt.u32.totalorder %s214_s17, %s384_s5 }
  0x54   :  { %p220_p6 = pnand %p218_p5, %p215_p4 }
  0x56   :  { %223 = shalt.err (!%p220_p6)
}
  0x57   :  { %86 = dma.vmem_to_hbm [thread:$0]  %s81_s9, 256, %s384_s5, [#allocation8], %s267_s14, %s267_s14, %s268_s15  }
  0x58   :  { %s224_s23 = scalar_lea.vmem %s343_s11, 256  ;;  %p229_p8 = scmp.lt.s32.totalorder %s343_s11, %s343_s11 }
  0x59   :  { %p225_p7 = scmp.ne.s32.totalorder %s343_s11, %s224_s23  ;;  %p230_p9 = scmp.lt.s32.totalorder %s224_s23, %s224_s23 }
  0x5b   :  { %p231_p10 = por %p230_p9, %p229_p8 }
  0x5d   :  { %p232_p11 = pnand %p231_p10, %p225_p7 }
  0x5f   :  { %235 = shalt.err (!%p232_p11)
}
  0x60   :  { %s236_s26 = scalar_lea.hbm %s385_s6, 256 }
  0x61   :  { %p237_p12 = scmp.ne.s32.totalorder %s385_s6, %s236_s26  ;;  %p240_p13 = scmp.lt.u32.totalorder %s236_s26, %s385_s6 }
  0x63   :  { %p242_p0 = pnand %p240_p13, %p237_p12 }
  0x65   :  { %245 = shalt.err (!%p242_p0)
}
  0x66   :  { %98 = dma.vmem_to_hbm [thread:$0]  %s343_s11, 256, %s385_s6, [#allocation13], %s267_s14, %s267_s14, %s268_s15  }
  0x67   :  { %256 = dma.done.wait [#allocation8], 256  }
  0x68   :  { %257 = vsyncadd [#allocation8], 4294967040 }
  0x69   :  { %258 = dma.done.wait [#allocation13], 256  }
  0x6a   :  { %259 = vsyncadd [#allocation13], 4294967040 }
  0x6b   :  { %105 = vsyncpa [#allocation7], 1 }
  0x6c   :  { %106 = vsyncpa [#allocation10], 1 }
  0x6d   :  { %107 = vsyncpa [#allocation8], 1 }
  0x6e   :  { %108 = vsyncpa [#allocation13], 1 }

</bundles_post_ra>
